<compile_context>
chip_gen: v5e
topology: v5e:2x2
jax: 0.10.0
libtpu: 0.0.40
codegen_flags: <defaults>
</compile_context>

<pallas_src>
import functools

import jax
import jax.numpy as jnp
from jax.experimental import pallas as pl
from jax.experimental.pallas import tpu as pltpu


def _round_up(x, m):
    return (x + m - 1) // m * m


def qnetwork_kernel(state_ref, action_ref, w1_ref, w2_ref, aux_ref, q_ref,
                    xcat_ref, *, state_dim, action_dim):
    w_dtype = w1_ref.dtype  # matmul dtype follows weight storage (f32 or bf16)

    # Build the concatenated fc1 input once in VMEM scratch -> single MXU pass
    # against the full, un-sliced W1 block.
    xcat_ref[:, 0:state_dim] = state_ref[...].astype(w_dtype)
    xcat_ref[:, state_dim:state_dim + action_dim] = action_ref[...].astype(w_dtype)

    b1 = aux_ref[0:1, :]        # (1, Hp) f32
    b2 = aux_ref[1:2, :]        # (1, Hp) f32
    w3_row = aux_ref[2:3, :]    # (1, Hp) f32
    b3 = aux_ref[3, 0]          # scalar f32

    # fc1 + ReLU (accumulate in f32).
    h1 = jnp.dot(xcat_ref[...], w1_ref[...],
                 preferred_element_type=jnp.float32) + b1
    h1 = jnp.maximum(h1, 0.0)

    # fc2 + ReLU.
    h2 = jnp.dot(h1.astype(w_dtype), w2_ref[...],
                 preferred_element_type=jnp.float32) + b2
    h2 = jnp.maximum(h2, 0.0)

    # q head (Hp -> 1): lane reduction (VPU mul + XLU reduce) instead of a
    # degenerate N=1 MXU matmul; store lane-dense as a (1, 1, TB) slab.
    qv = jnp.sum(h2 * w3_row, axis=-1) + b3          # (TB,) f32
    q_ref[...] = qv[None, None, :].astype(q_ref.dtype)


def _choose_batch_tile(batch, batch_tile):
    """Pick TB: a multiple-of-8 divisor of `batch`, <= batch_tile, preferring a
    choice that yields >= 2 grid steps (v7x: both TensorCores busy)."""
    cap = max(8, batch_tile)
    divs = [d for d in range(8, min(batch, cap) + 1, 8) if batch % d == 0]
    multi = [d for d in divs if batch // d >= 2]
    if multi:
        return max(multi)       # biggest tile that still gives >= 2 grid steps
    if divs:
        return max(divs)        # single full-batch tile (batch itself)
    if batch <= cap:
        return batch            # small / ragged batch: one full-array tile
    return cap                  # fallback: padded tiling


def qnetwork_forward(state, action, packed_params, *, batch_tile=1024):
    """Pallas implementation of QNetwork.forward(state, action).

    `packed_params` comes from `pack_params` (one-time layout conversion);
    the per-step forward is a single pallas_call with (almost) no XLA glue."""
    w1, w2, aux = packed_params
    B, state_dim = state.shape
    action_dim = action.shape[1]
    in_dim, hidden_p = w1.shape
    assert in_dim == state_dim + action_dim

    TB = _choose_batch_tile(B, batch_tile)
    pad = (-B) % TB
    if pad:  # fallback only (awkward batch sizes with no friendly divisor)
        state = jnp.pad(state, ((0, pad), (0, 0)))
        action = jnp.pad(action, ((0, pad), (0, 0)))
    Bp = B + pad
    n_tiles = Bp // TB

    kernel = functools.partial(qnetwork_kernel,
                               state_dim=state_dim, action_dim=action_dim)

    w_itemsize = jnp.dtype(w1.dtype).itemsize
    flops = 2 * Bp * (in_dim * hidden_p + hidden_p * hidden_p + hidden_p)
    bytes_accessed = (Bp * in_dim * 4
                      + (w1.size + w2.size) * w_itemsize
                      + aux.size * 4
                      + Bp * 4)
    cost = pl.CostEstimate(flops=int(flops), transcendentals=0,
                           bytes_accessed=int(bytes_accessed))

    # Resident-weight VMEM guard (only matters for large hidden_dim): weights
    # are double-buffered by the pipeliner, plus activation blocks + scratch.
    vmem_est = (2 * ((w1.size + w2.size) * w_itemsize + aux.size * 4)
                + 2 * TB * in_dim * 4
                + TB * in_dim * w_itemsize
                + 6 * TB * hidden_p * 4
                + 2 * TB * 4
                + (1 << 20))
    cp_kwargs = dict(dimension_semantics=("parallel",))  # v7x: shard batch tiles
    if vmem_est > 30 * 1024 * 1024:
        cp_kwargs["vmem_limit_bytes"] = int(min(vmem_est, 100 * 1024 * 1024))

    q = pl.pallas_call(
        kernel,
        out_shape=jax.ShapeDtypeStruct((n_tiles, 1, TB), jnp.float32),
        grid_spec=pltpu.PrefetchScalarGridSpec(
            num_scalar_prefetch=0,
            grid=(n_tiles,),
            in_specs=[
                pl.BlockSpec((TB, state_dim), lambda i: (i, 0)),
                pl.BlockSpec((TB, action_dim), lambda i: (i, 0)),
                # Weights/aux: same block every step -> stay VMEM-resident.
                pl.BlockSpec((in_dim, hidden_p), lambda i: (0, 0)),
                pl.BlockSpec((hidden_p, hidden_p), lambda i: (0, 0)),
                pl.BlockSpec((4, hidden_p), lambda i: (0, 0)),
            ],
            out_specs=pl.BlockSpec((1, 1, TB), lambda i: (i, 0, 0)),
            scratch_shapes=[pltpu.VMEM((TB, in_dim), w1.dtype)],  # fc1 concat tile
        ),
        compiler_params=pltpu.CompilerParams(**cp_kwargs),
        cost_estimate=cost,
    )(state, action, w1, w2, aux)

    q = q.reshape(Bp, 1)
    return q[:B] if pad else q


def init_params(key, state_dim, action_dim, hidden_dim):
    """Deterministic init mimicking nn.Linear default (uniform +/- 1/sqrt(fan_in)).

    Weights stored as (in_features, out_features), biases as (1, out)."""
    ks = jax.random.split(key, 6)
    in1 = state_dim + action_dim

    def lin(kw, kb, fan_in, fan_out):
        bound = 1.0 / jnp.sqrt(fan_in)
        w = jax.random.uniform(kw, (fan_in, fan_out), jnp.float32, -bound, bound)
        b = jax.random.uniform(kb, (1, fan_out), jnp.float32, -bound, bound)
        return w, b

    w1, b1 = lin(ks[0], ks[1], in1, hidden_dim)
    w2, b2 = lin(ks[2], ks[3], hidden_dim, hidden_dim)
    w3, b3 = lin(ks[4], ks[5], hidden_dim, 1)
    return (w1, b1, w2, b2, w3, b3)


def pack_params(params, weight_dtype=jnp.float32):
    """One-time conversion of (w1,b1,w2,b2,w3,b3) into the kernel layout:
    (w1 (S+A, Hp), w2 (Hp, Hp), aux (4, Hp)) with Hp = hidden rounded up to a
    multiple of 128 (zero padding -> mathematically inert, full-lane vregs).

    Use weight_dtype=jnp.bfloat16 on v6e/v7x (MXU-native); keep f32 on v5e
    (no bf16 VPU datapath there).  Biases / final head stay f32."""
    w1, b1, w2, b2, w3, b3 = params
    in1, hidden = w1.shape
    hidden_p = _round_up(hidden, 128)
    ph = hidden_p - hidden

    w1p = jnp.pad(w1, ((0, 0), (0, ph)))
    w2p = jnp.pad(w2, ((0, ph), (0, ph)))
    aux = jnp.stack([
        jnp.pad(jnp.reshape(b1, (hidden,)), (0, ph)),
        jnp.pad(jnp.reshape(b2, (hidden,)), (0, ph)),
        jnp.pad(jnp.reshape(w3, (hidden,)), (0, ph)),
        jnp.full((hidden_p,), jnp.reshape(b3, ())),
    ], axis=0).astype(jnp.float32)
    return (w1p.astype(weight_dtype), w2p.astype(weight_dtype), aux)


def qnetwork_reference(state, action, params):
    """Pure-JAX reference for correctness check."""
    w1, b1, w2, b2, w3, b3 = params
    x = jnp.concatenate([state, action], axis=-1)
    x = jax.nn.relu(x @ w1 + b1)
    x = jax.nn.relu(x @ w2 + b2)
    return x @ w3 + b3


if __name__ == "__main__":
    # Small shapes consistent with the module's forward.
    B, state_dim, action_dim, hidden_dim = 8, 8, 4, 32

    key = jax.random.PRNGKey(0)
    k_state, k_action, k_params = jax.random.split(key, 3)

    state = jax.random.normal(k_state, (B, state_dim), jnp.float32)
    action = jax.random.normal(k_action, (B, action_dim), jnp.float32)
    params = init_params(k_params, state_dim, action_dim, hidden_dim)

    q_ref = qnetwork_reference(state, action, params)

    # f32-weight path.  Tolerance allows for MXU default-precision matmul
    # passes differing slightly from the XLA reference.
    packed_f32 = pack_params(params, jnp.float32)
    q = qnetwork_forward(state, action, packed_f32)
    jax.block_until_ready(q)
    assert q.shape == (B, 1), q.shape
    assert jnp.allclose(q, q_ref, atol=5e-3, rtol=5e-3), (q, q_ref)

    # bf16-weight path (v6e/v7x MXU-native); elementwise math stays f32.
    packed_bf16 = pack_params(params, jnp.bfloat16)
    q_bf16 = qnetwork_forward(state, action, packed_bf16)
    jax.block_until_ready(q_bf16)
    assert q_bf16.shape == (B, 1), q_bf16.shape
    assert jnp.allclose(q_bf16, q_ref, atol=1e-1, rtol=1e-1), (q_bf16, q_ref)

    print("KERNEL_OK")
</pallas_src>

<mosaic_0001>
module attributes {stable_mosaic.version = 11 : i64} {
  func.func @qnetwork_kernel(%arg0: i32, %arg1: memref<8x8xf32, #tpu.memory_space<vmem>>, %arg2: memref<8x4xf32, #tpu.memory_space<vmem>>, %arg3: memref<12x128xf32, #tpu.memory_space<vmem>>, %arg4: memref<128x128xf32, #tpu.memory_space<vmem>>, %arg5: memref<4x128xf32, #tpu.memory_space<vmem>>, %arg6: memref<1x1x8xf32, #tpu.memory_space<vmem>>, %arg7: memref<8x12xf32, #tpu.memory_space<vmem>>) attributes {dimension_semantics = [#tpu.dimension_semantics<parallel>], iteration_bounds = array<i64: 1>, scalar_prefetch = 0 : i64, scratch_operands = 1 : i64, tpu.core_type = #tpu.core_type<tc>, window_params = [{transform_indices = @transform_0, window_bounds = array<i64: 8, 8>}, {transform_indices = @transform_1, window_bounds = array<i64: 8, 4>}, {pipeline_mode = #tpu.pipeline_mode<synchronous>, transform_indices = @transform_2, window_bounds = array<i64: 12, 128>}, {pipeline_mode = #tpu.pipeline_mode<synchronous>, transform_indices = @transform_3, window_bounds = array<i64: 128, 128>}, {pipeline_mode = #tpu.pipeline_mode<synchronous>, transform_indices = @transform_4, window_bounds = array<i64: 4, 128>}, {transform_indices = @transform_5, window_bounds = array<i64: 1, 1, 8>}]} {
    %c0 = arith.constant 0 : index
    %c0_0 = arith.constant 0 : index
    %0 = vector.load %arg1[%c0, %c0_0] : memref<8x8xf32, #tpu.memory_space<vmem>>, vector<8x8xf32>
    %c0_1 = arith.constant 0 : index
    %c0_2 = arith.constant 0 : index
    %1 = vector.load %arg7[%c0_1, %c0_2] : memref<8x12xf32, #tpu.memory_space<vmem>>, vector<8x8xf32>
    tpu.vector_store %arg7[%c0_1, %c0_2], %0 {strides = array<i32>} : memref<8x12xf32, #tpu.memory_space<vmem>>, vector<8x8xf32>,
    %c0_3 = arith.constant 0 : index
    %c0_4 = arith.constant 0 : index
    %2 = vector.load %arg2[%c0_3, %c0_4] : memref<8x4xf32, #tpu.memory_space<vmem>>, vector<8x4xf32>
    %c0_5 = arith.constant 0 : index
    %c8 = arith.constant 8 : index
    %3 = vector.load %arg7[%c0_5, %c8] : memref<8x12xf32, #tpu.memory_space<vmem>>, vector<8x4xf32>
    tpu.vector_store %arg7[%c0_5, %c8], %2 {strides = array<i32>} : memref<8x12xf32, #tpu.memory_space<vmem>>, vector<8x4xf32>,
    %c0_6 = arith.constant 0 : index
    %c0_7 = arith.constant 0 : index
    %4 = vector.load %arg5[%c0_6, %c0_7] : memref<4x128xf32, #tpu.memory_space<vmem>>, vector<1x128xf32>
    %c1 = arith.constant 1 : index
    %c0_8 = arith.constant 0 : index
    %5 = vector.load %arg5[%c1, %c0_8] : memref<4x128xf32, #tpu.memory_space<vmem>>, vector<1x128xf32>
    %c2 = arith.constant 2 : index
    %c0_9 = arith.constant 0 : index
    %6 = vector.load %arg5[%c2, %c0_9] : memref<4x128xf32, #tpu.memory_space<vmem>>, vector<1x128xf32>
    %c3 = arith.constant 3 : index
    %c0_10 = arith.constant 0 : index
    %7 = vector.load %arg5[%c3, %c0_10] : memref<4x128xf32, #tpu.memory_space<vmem>>, vector<1x1xf32>
    %8 = vector.extract %7[0, 0] : f32 from vector<1x1xf32>
    %c0_11 = arith.constant 0 : index
    %c0_12 = arith.constant 0 : index
    %9 = vector.load %arg7[%c0_11, %c0_12] : memref<8x12xf32, #tpu.memory_space<vmem>>, vector<8x12xf32>
    %c0_13 = arith.constant 0 : index
    %c0_14 = arith.constant 0 : index
    %10 = vector.load %arg3[%c0_13, %c0_14] : memref<12x128xf32, #tpu.memory_space<vmem>>, vector<12x128xf32>
    %cst = arith.constant dense<0.000000e+00> : vector<8x128xf32>
    %11 = tpu.matmul %9, %10, %cst {dimension_numbers = #tpu.dot_dimension_numbers<[1], [0], [0], [1], [0, 0, 1, 1], [], []>} : vector<8x12xf32>, vector<12x128xf32>, vector<8x128xf32> -> vector<8x128xf32>
    %12 = vector.broadcast %4 : vector<1x128xf32> to vector<8x128xf32>
    %13 = arith.addf %11, %12 : vector<8x128xf32>
    %cst_15 = arith.constant 0.000000e+00 : f32
    %14 = vector.broadcast %cst_15 : f32 to vector<8x128xf32>
    %15 = arith.maximumf %13, %14 : vector<8x128xf32>
    %c0_16 = arith.constant 0 : index
    %c0_17 = arith.constant 0 : index
    %16 = vector.load %arg4[%c0_16, %c0_17] : memref<128x128xf32, #tpu.memory_space<vmem>>, vector<128x128xf32>
    %cst_18 = arith.constant dense<0.000000e+00> : vector<8x128xf32>
    %17 = tpu.matmul %15, %16, %cst_18 {dimension_numbers = #tpu.dot_dimension_numbers<[1], [0], [0], [1], [0, 0, 1, 1], [], []>} : vector<8x128xf32>, vector<128x128xf32>, vector<8x128xf32> -> vector<8x128xf32>
    %18 = vector.broadcast %5 : vector<1x128xf32> to vector<8x128xf32>
    %19 = arith.addf %17, %18 : vector<8x128xf32>
    %cst_19 = arith.constant 0.000000e+00 : f32
    %20 = vector.broadcast %cst_19 : f32 to vector<8x128xf32>
    %21 = arith.maximumf %19, %20 : vector<8x128xf32>
    %22 = vector.broadcast %6 : vector<1x128xf32> to vector<8x128xf32>
    %23 = arith.mulf %21, %22 : vector<8x128xf32>
    %cst_20 = arith.constant dense<0.000000e+00> : vector<8xf32>
    %24 = vector.multi_reduction <add>, %23, %cst_20 [1] : vector<8x128xf32> to vector<8xf32>
    %25 = vector.broadcast %8 : f32 to vector<8xf32>
    %26 = arith.addf %24, %25 : vector<8xf32>
    %27 = vector.shape_cast %26 : vector<8xf32> to vector<1x1x8xf32>
    %c0_21 = arith.constant 0 : index
    %c0_22 = arith.constant 0 : index
    %c0_23 = arith.constant 0 : index
    %28 = vector.load %arg6[%c0_21, %c0_22, %c0_23] : memref<1x1x8xf32, #tpu.memory_space<vmem>>, vector<1x1x8xf32>
    tpu.vector_store %arg6[%c0_21, %c0_22, %c0_23], %27 {strides = array<i32>} : memref<1x1x8xf32, #tpu.memory_space<vmem>>, vector<1x1x8xf32>,
    return
  }
  func.func @transform_0(%arg0: i32) -> (i32, i32) {
    %c0_i32 = arith.constant 0 : i32
    %c0_i32_0 = arith.constant 0 : i32
    return %arg0, %c0_i32 : i32, i32
  }
  func.func @transform_1(%arg0: i32) -> (i32, i32) {
    %c0_i32 = arith.constant 0 : i32
    %c0_i32_0 = arith.constant 0 : i32
    return %arg0, %c0_i32 : i32, i32
  }
  func.func @transform_2(%arg0: i32) -> (i32, i32) {
    %c0_i32 = arith.constant 0 : i32
    %c0_i32_0 = arith.constant 0 : i32
    %c0_i32_1 = arith.constant 0 : i32
    return %c0_i32, %c0_i32_0 : i32, i32
  }
  func.func @transform_3(%arg0: i32) -> (i32, i32) {
    %c0_i32 = arith.constant 0 : i32
    %c0_i32_0 = arith.constant 0 : i32
    %c0_i32_1 = arith.constant 0 : i32
    return %c0_i32, %c0_i32_0 : i32, i32
  }
  func.func @transform_4(%arg0: i32) -> (i32, i32) {
    %c0_i32 = arith.constant 0 : i32
    %c0_i32_0 = arith.constant 0 : i32
    %c0_i32_1 = arith.constant 0 : i32
    return %c0_i32, %c0_i32_0 : i32, i32
  }
  func.func @transform_5(%arg0: i32) -> (i32, i32, i32) {
    %c0_i32 = arith.constant 0 : i32
    %c0_i32_0 = arith.constant 0 : i32
    %c0_i32_1 = arith.constant 0 : i32
    return %arg0, %c0_i32, %c0_i32_0 : i32, i32, i32
  }
}

</mosaic_0001>

<bundles_post_ra>
// kernel: tpu_custom_call.1
= control target key start
LH: loop header
LB: loop body
LE: loop exit
PB: predicated region body
PF: predicated region fallthrough
CT: control target
= control target key end

     0   :  { %10 = vsyncpa [#allocation4], 0  ;;  %s322_s0 = inlined_call_operand.vmem [shape: f32[8,8], index: 0, kind: input, shape index: {}]   ;;  %s323_s1 = inlined_call_operand.vmem [shape: f32[8,4], index: 1, kind: input, shape index: {}]   ;;  %s324_s2 = inlined_call_operand.hbm [shape: f32[12,128], index: 2, kind: input, shape index: {}]   ;;  %s325_s3 = inlined_call_operand.hbm [shape: f32[128,128], index: 3, kind: input, shape index: {}]   ;;  %s326_s4 = inlined_call_operand.vmem [shape: f32[4,128], index: 4, kind: input, shape index: {}]   ;;  %s327_s5 = inlined_call_operand.hbm [shape: f32[1,1,8], index: 5, kind: output, shape index: {}]  }
   0x1   :  { %11 = vsyncpa [#allocation7], 0 }
   0x2   :  { %12 = vsyncpa [#allocation5], 0  ;;  %s21_s20 = sshll.u32 %s324_s2, 4  ;;  %s260_s21 = smov [#allocation3]   ;;  %s22_s20 = int_to_ptr.hbm [resolvable:$true] %s21_s20 }
   0x3   :  { %s23_s22 = sshll.u32 %s260_s21, 4  ;;  %s34_s25 = sshll.u32 %s325_s3, 4  ;;  %s24_s22 = int_to_ptr.vmem [resolvable:$true] %s23_s22  ;;  %s35_s25 = int_to_ptr.hbm [resolvable:$true] %s34_s25 }
   0x4   :  { %s261_s26 = smov 128   ;;  %s262_s27 = smov 8  }
   0x5   :  { %29 = dma.hbm_to_vmem [thread:$0]  %s22_s20, 256, %s24_s22, [#allocation4], %s261_s26, %s261_s26, %s262_s27  }
   0x6   :  { %s263_s28 = smov [#allocation6]  }
   0x7   :  { %s36_s29 = sshll.u32 %s263_s28, 4  ;;  %s37_s29 = int_to_ptr.vmem [resolvable:$true] %s36_s29 }
   0x8   :  { %42 = dma.hbm_to_vmem [thread:$0]  %s35_s25, 2048, %s37_s29, [#allocation7], %s261_s26, %s261_s26, %s262_s27  }
   0x9   :  { %254 = dma.done.wait [#allocation4], 256  }
   0xa   :  { %255 = vsyncadd [#allocation4], 4294967040 }
   0xb   :  { %256 = dma.done.wait [#allocation7], 2048  }
   0xc   :  { %257 = vsyncadd [#allocation7], 4294965248  ;;  %v56_v0 = vld [vmem:[%s323_s1] sm:$0xff]  ;;  %vm54_vm0 = vcmask 64512   ;;  %v70_v2 = vld [vmem:[#allocation3 + $0x8] sm:$0xf]  ;;  %v146_v33 = vlaneseq }
   0xd   :  { %58 = vrot.lane.b32.xlu0 %v56_v0, %s262_s27  ;;  %v53_v1 = vld [vmem:[%s322_s0] sm:$0xff]  ;;  %vm76_vm1 = vcmask 1043456   ;;  %v69_v3 = vld [vmem:[#allocation3] sm:$0xff]  ;;  %v116_v4 = vld [vmem:[#allocation6 + $0x78] sm:$0xff]  ;;  %vm61_vm2 = vcmask 97344   ;;  %vm72_vm3 = vcmask 97280  }
   0xe   :  { %55 = vst.msk [vmem:[#allocation2] sm:$0xff] %vm54_vm0, %v53_v1  ;;  %170 = vmatpush.msk.msra.mxu0 %vm76_vm1, %v70_v2  ;;  %v115_v5 = vld [vmem:[#allocation6 + $0x70] sm:$0xff]  ;;  %118 = vmatpush.msra.mxu1 %v116_v4  ;;  %v114_v6 = vld [vmem:[#allocation6 + $0x68] sm:$0xff]  ;;  %v113_v7 = vld [vmem:[#allocation6 + $0x60] sm:$0xff]  ;;  %v147_v35 = vand.u32 127, %v146_v33  ;;  %s264_s14 = smov [#allocation8]  }
   0xf   :  { %v112_v8 = vld [vmem:[#allocation6 + $0x58] sm:$0xff]  ;;  %v111_v9 = vld [vmem:[#allocation6 + $0x50] sm:$0xff]  ;;  %v110_v10 = vld [vmem:[#allocation6 + $0x48] sm:$0xff]  ;;  %s157_s15 = sshll.u32 %s264_s14, 4  ;;  %s159_s18 = sshll.u32 %s327_s5, 4  ;;  %vm150_vm4 = vcmask 57344   ;;  %s158_s15 = int_to_ptr.vmem [resolvable:$true] %s157_s15  ;;  %s160_s18 = int_to_ptr.hbm [resolvable:$true] %s159_s18 }
  0x10   :  { %95 = vmatpush.msra.mxu0 %v69_v3  ;;  %119 = vmatpush.msra.mxu1 %v115_v5  ;;  %v109_v11 = vld [vmem:[#allocation6 + $0x40] sm:$0xff]  ;;  %v108_v12 = vld [vmem:[#allocation6 + $0x38] sm:$0xff]  ;;  %v107_v13 = vld [vmem:[#allocation6 + $0x30] sm:$0xff] }
  0x11   :  { %v106_v14 = vld [vmem:[#allocation6 + $0x28] sm:$0xff]  ;;  %v105_v15 = vld [vmem:[#allocation6 + $0x20] sm:$0xff]  ;;  %v104_v16 = vld [vmem:[#allocation6 + $0x18] sm:$0xff] }
  0x12   :  { %120 = vmatpush.msra.mxu1 %v114_v6  ;;  %v103_v19 = vld [vmem:[#allocation6 + $0x10] sm:$0xff]  ;;  %v102_v20 = vld [vmem:[#allocation6 + $0x8] sm:$0xff]  ;;  %v101_v21 = vld [vmem:[#allocation6] sm:$0xff] }
  0x13   :  { %v179_v22 = vld [vmem:[%s326_s4] ss:$0 sm:$0xff]  ;;  %v66_v26 = vld [vmem:[%s326_s4 + $0x3] sm:$0x1]  ;;  %v180_v27 = vld [vmem:[%s326_s4 + $0x1] ss:$0 sm:$0xff] }
  0x14   :  { %121 = vmatpush.msra.mxu1 %v113_v7  ;;  %172 = vpush %v66_v26  ;;  %v181_v30 = vld [vmem:[%s326_s4 + $0x2] ss:$0 sm:$0xff] }
  0x16   :  { %122 = vmatpush.msra.mxu1 %v112_v8 }
  0x18   :  { %123 = vmatpush.msra.mxu1 %v111_v9 }
  0x1a   :  { %124 = vmatpush.msra.mxu1 %v110_v10 }
  0x1c   :  { %125 = vmatpush.msra.mxu1 %v109_v11 }
  0x1e   :  { %126 = vmatpush.msra.mxu1 %v108_v12 }
  0x20   :  { %127 = vmatpush.msra.mxu1 %v107_v13 }
  0x22   :  { %128 = vmatpush.msra.mxu1 %v106_v14 }
  0x24   :  { %129 = vmatpush.msra.mxu1 %v105_v15 }
  0x26   :  { %130 = vmatpush.msra.mxu1 %v104_v16 }
  0x28   :  { %131 = vmatpush.msra.mxu1 %v103_v19 }
  0x2a   :  { %132 = vmatpush.msra.mxu1 %v102_v20 }
  0x2c   :  { %133 = vmatpush.msra.mxu1 %v101_v21 }
  0x45   :  { %s173_s13 = spop %172 }
  0x46   :  { %v143_v34 = vstv %s173_s13 }
  0x7f   :  { %v59_v17 = vpop.permute.xlu0 %58 }
  0x80   :  { %62 = vst.msk [vmem:[#allocation2] sm:$0xff] %vm61_vm2, %v59_v17 }
  0x87   :  { %v68_v18 = vld [vmem:[#allocation2] sm:$0xff] }
  0x88   :  { %171 = vmatmul.msk.f32.vlgmr.msra.gmra.mxu0 %vm72_vm3, %v68_v18 }
 0x105   :  { %v97_v23 = vpop.f32.mrf.mxu0 }
 0x106   :  { %v98_v24 = vadd.f32 %v179_v22, %v97_v23 }
 0x108   :  { %v100_v25 = vmax.f32 %v98_v24, 0.0 }
 0x10a   :  { %134 = vmatmul.f32.vlgmr.msra.gmra.mxu1 %v100_v25 }
 0x187   :  { %v135_v28 = vpop.f32.mrf.mxu1 }
 0x188   :  { %v136_v29 = vadd.f32 %v180_v27, %v135_v28 }
 0x18a   :  { %v138_v31 = vmax.f32 %v136_v29, 0.0 }
 0x18c   :  { %v140_v32 = vmul.f32 %v181_v30, %v138_v31 }
 0x18e   :  { %141 = vadd.xlane.f32.xlu0 %v140_v32 }
 0x201   :  { %v142_v36 = vpop.xlane.xlu0 %141 }
 0x202   :  { %v144_v37 = vadd.f32 %v143_v34, %v142_v36 }
 0x204   :  { %v148_v38 = vperm.slane %v144_v37, %v147_v35 }
 0x206   :  { %151 = vst.msk [vmem:[#allocation8] sm:$0x1] %vm150_vm4, %v148_v38 }
 0x207   :  { %162 = dma.vmem_to_hbm [thread:$0]  %s158_s15, 16, %s160_s18, [#allocation5]  }
 0x208   :  { %258 = dma.done.wait [#allocation5], 16  }
 0x209   :  { %259 = vsyncadd [#allocation5], 4294967280 }
 0x20a   :  { %167 = vsyncpa [#allocation4], 1 }
 0x20b   :  { %168 = vsyncpa [#allocation7], 1 }
 0x20c   :  { %169 = vsyncpa [#allocation5], 1 }

</bundles_post_ra>
